<compile_context>
chip_gen: v7x
topology: tpu7x:2x2x1
jax: 0.10.0
libtpu: 0.0.40
codegen_flags: <defaults>
</compile_context>

<pallas_src>
import functools

import jax
import jax.numpy as jnp
from jax import lax
from jax.experimental import pallas as pl
from jax.experimental.pallas import tpu as pltpu
import numpy as np


def _sobel_kernel(x_ref, rm_ref, o_ref, *, epsilon, W, pad_rows):
    """One block = (R, L): TB image-slabs stacked along sublanes, G images packed along
    lanes (each image owns a W-wide lane band and an HP-tall row band inside its slab)."""
    x = x_ref[...].astype(jnp.float32)
    R, L = x.shape

    # Column (within-image) masks, built once per step on a single-sublane strip (~free).
    cim = lax.broadcasted_iota(jnp.int32, (1, L), 1) % W
    m_hm = cim >= 1            # column j-1 is inside the same image
    m_hp = cim <= (W - 2)      # column j+1 is inside the same image

    zero = jnp.float32(0.0)

    def sh(a, dx):             # a[i, j+dx] with per-image zero padding along columns
        r = pltpu.roll(a, shift=(-dx) % L, axis=1)
        return jnp.where(m_hm if dx < 0 else m_hp, r, zero)

    def vroll(a, dy):          # a[i+dy, j]; block-wrapping, masking handled by the caller
        return pltpu.roll(a, shift=(-dy) % R, axis=0)

    # avg_pool2d(k=3, s=1, p=1, count_include_pad=True) == separable [1,1,1] x [1,1,1] / 9.
    # The /9 is deferred into the final 1/36 scale (pooled9 == 9 * pooled).
    hs = sh(x, -1) + x + sh(x, 1)

    if pad_rows:
        # HP > H: zero pad rows below each image already give vertical zero padding for
        # hs; only pooled9's pad rows (which pick up hs[H-1]) must be re-zeroed before it
        # is shifted vertically.  Row-validity mask arrives precomputed in rm_ref[:, 0].
        pooled9 = (vroll(hs, -1) + hs + vroll(hs, 1)) * rm_ref[:, 0:1]
        p_up = vroll(pooled9, -1)
        p_dn = vroll(pooled9, 1)
    else:
        # HP == H: slabs are back to back along sublanes -> mask every vertical shift.
        m_vm = rm_ref[:, 0:1]  # row i-1 is inside the same image (0.0 / 1.0)
        m_vp = rm_ref[:, 1:2]  # row i+1 is inside the same image
        pooled9 = vroll(hs, -1) * m_vm + hs + vroll(hs, 1) * m_vp
        p_up = vroll(pooled9, -1) * m_vm
        p_dn = vroll(pooled9, 1) * m_vp

    vs = p_up + 2.0 * pooled9 + p_dn                        # vertical [1, 2, 1]   (x9)
    vd = p_up - p_dn                                        # vertical [1, 0, -1]  (x9)
    scale = jnp.float32(1.0 / 36.0)                         # (1/9 avg-pool) * (1/4 Sobel)
    grad_x = (sh(vs, -1) - sh(vs, 1)) * scale               # horizontal [1, 0, -1]
    grad_y = (sh(vd, -1) + 2.0 * vd + sh(vd, 1)) * scale    # horizontal [1, 2, 1]

    s = grad_x * grad_x + grad_y * grad_y + jnp.float32(epsilon)
    o_ref[...] = (s * lax.rsqrt(s)).astype(o_ref.dtype)     # sqrt(s) on the EUP slot


def sobel_operator(x, epsilon):
    """x: (B, C, H, W). Returns (B, C, H, W), same dtype, matching the PyTorch module."""
    b, c, h, w = x.shape
    nb = b * c
    out_dtype = x.dtype
    itemsize = x.dtype.itemsize

    # ---- lane packing: aim for a lane width L = g*w that is a multiple of 128 ----
    if w % 128 == 0:
        g = 1                                    # already lane-dense, no packing transpose
    elif 128 % w == 0:
        g = 128 // w                             # exact 128-lane packing
    else:
        g_lcm = int(np.lcm(w, 128)) // w         # smallest g with (g*w) % 128 == 0
        g = g_lcm if (g_lcm * w <= 1024 and g_lcm <= max(8, nb)) else max(1, 128 // w)
    L = g * w

    # ---- sublane-aligned slab height (8 for f32, 16 for bf16, ...) ----
    sub = max(8, 32 // itemsize)
    hp = -(-h // sub) * sub
    pad_rows = hp > h
    m = -(-nb // g)                              # number of packed slabs

    # ---- VMEM budget (v7x has only 64 MiB per TensorCore) & block sizing ----
    try:
        vmem_cap = int(pltpu.get_tpu_info().vmem_capacity_bytes)
    except Exception:
        vmem_cap = 64 * 1024 * 1024              # conservative (v7x-sized) fallback
    vmem_budget = min(vmem_cap * 3 // 4, 96 * 1024 * 1024)
    live_factor = 14                             # double-buffered I/O + f32 intermediates
    target_block = min(2 * 1024 * 1024, vmem_budget // live_factor)

    bytes_per_row = L * 4                        # intermediates are f32
    tb = max(1, max(hp, target_block // bytes_per_row) // hp)
    tb = min(tb, m)
    if m >= 4:                                   # >= 4 grid steps: megacore + pipelining
        tb = min(tb, m // 4)
    elif m >= 2:
        tb = min(tb, (m + 1) // 2)
    steps = -(-m // tb)
    if steps >= 3 and steps % 2 == 1:            # even step count for the v7x 2-TC split
        for t in range(tb - 1, 0, -1):
            if (-(-m // t)) % 2 == 0:
                tb = t
                break
        steps = -(-m // tb)
        if steps % 2 == 1:
            steps += 1                           # pad one cheap all-zero block
    mp = steps * tb
    R = tb * hp
    block_bytes = R * L * 4
    vmem_limit = int(min(vmem_budget, max(32 * 1024 * 1024, live_factor * block_bytes)))
    # TODO(synk): a full (HP, G*W) image plane must fit in one block; very tall/wide
    # images would need halo-aware H/W tiling, which is not implemented here.

    # ---- single pad + (optional) pack transpose: images side by side along lanes ----
    n_total = mp * g
    xr = x.reshape(nb, h, w)
    if n_total != nb or hp != h:
        xr = jnp.pad(xr, ((0, n_total - nb), (0, hp - h), (0, 0)))
    if g > 1:
        xr = xr.reshape(mp, g, hp, w).transpose(0, 2, 1, 3)   # (mp, hp, g, w)
    xr = xr.reshape(mp * hp, L)

    # ---- precomputed per-row masks (block index never changes -> DMA'd once) ----
    rim = np.arange(R) % hp
    if pad_rows:
        col0 = (rim < h)                         # row is a valid image row
        col1 = np.ones_like(col0)
    else:
        col0 = (rim >= 1)                        # row i-1 stays inside the image
        col1 = (rim <= h - 2)                    # row i+1 stays inside the image
    row_mask = jnp.asarray(np.stack([col0, col1], axis=1).astype(np.float32))  # (R, 2)

    out = pl.pallas_call(
        functools.partial(_sobel_kernel, epsilon=float(epsilon), W=w, pad_rows=pad_rows),
        out_shape=jax.ShapeDtypeStruct((mp * hp, L), out_dtype),
        grid=(steps,),
        in_specs=[pl.BlockSpec((R, L), lambda i: (i, 0)),
                  pl.BlockSpec((R, 2), lambda i: (0, 0))],
        out_specs=pl.BlockSpec((R, L), lambda i: (i, 0)),
        compiler_params=pltpu.CompilerParams(
            dimension_semantics=("parallel",),
            vmem_limit_bytes=vmem_limit),
    )(xr, row_mask)

    # ---- undo the packing ----
    out = out.reshape(mp, hp, g, w)
    if g > 1:
        out = out.transpose(0, 2, 1, 3)          # (mp, g, hp, w)
    out = out.reshape(n_total, hp, w)[:nb, :h, :]
    return out.reshape(b, c, h, w)


def _reference(x, epsilon):
    """Pure-numpy reference implementing the PyTorch module semantics."""
    b, c, h, w = x.shape
    xr = np.asarray(x, np.float32).reshape(b * c, h, w)

    def conv3(img, k):
        pad = np.pad(img, ((1, 1), (1, 1)))
        out = np.zeros_like(img)
        for ky in range(3):
            for kx in range(3):
                out += k[ky, kx] * pad[ky:ky + h, kx:kx + w]
        return out

    kx = np.array([[1, 0, -1], [2, 0, -2], [1, 0, -1]], np.float32) / 4.0
    ky = np.array([[1, 2, 1], [0, 0, 0], [-1, -2, -1]], np.float32) / 4.0
    kavg = np.full((3, 3), 1.0 / 9.0, np.float32)

    outs = []
    for n in range(b * c):
        p = conv3(xr[n], kavg)
        gx = conv3(p, kx)
        gy = conv3(p, ky)
        outs.append(np.sqrt(gx * gx + gy * gy + epsilon))
    return np.stack(outs).reshape(b, c, h, w)


if __name__ == "__main__":
    epsilon = 1e-4
    key = jax.random.PRNGKey(0)

    # Primary case (H % 8 == 0 path) plus one pad-row / multi-slab case.
    for shape in [(2, 4, 16, 16), (3, 4, 12, 16)]:
        key, sub = jax.random.split(key)
        x = jax.random.normal(sub, shape, dtype=jnp.float32)
        y = jax.block_until_ready(sobel_operator(x, epsilon))
        y_ref = _reference(np.asarray(x), epsilon)
        np.testing.assert_allclose(np.asarray(y), y_ref, rtol=1e-5, atol=1e-5)

    print("KERNEL_OK")
</pallas_src>

<mosaic_0001>
module attributes {stable_mosaic.version = 11 : i64} {
  func.func @_sobel_kernel(%arg0: i32, %arg1: memref<16x128xf32, #tpu.memory_space<vmem>>, %arg2: memref<16x2xf32, #tpu.memory_space<vmem>>, %arg3: memref<16x128xf32, #tpu.memory_space<vmem>>) attributes {dimension_semantics = [#tpu.dimension_semantics<parallel>], iteration_bounds = array<i64: 1>, scalar_prefetch = 0 : i64, scratch_operands = 0 : i64, tpu.core_type = #tpu.core_type<tc>, window_params = [{transform_indices = @transform_0, window_bounds = array<i64: 16, 128>}, {pipeline_mode = #tpu.pipeline_mode<synchronous>, transform_indices = @transform_1, window_bounds = array<i64: 16, 2>}, {transform_indices = @transform_2, window_bounds = array<i64: 16, 128>}]} {
    %c0 = arith.constant 0 : index
    %c0_0 = arith.constant 0 : index
    %0 = vector.load %arg1[%c0, %c0_0] : memref<16x128xf32, #tpu.memory_space<vmem>>, vector<16x128xf32>
    %1 = tpu.iota {dimensions = array<i32: 1>} : vector<1x128xi32>
    %c16_i32 = arith.constant 16 : i32
    %c0_i32 = arith.constant 0 : i32
    %2 = arith.cmpi eq, %c16_i32, %c0_i32 : i32
    %c1_i32 = arith.constant 1 : i32
    %3 = arith.select %2, %c1_i32, %c16_i32 : i32
    %4 = vector.broadcast %3 : i32 to vector<1x128xi32>
    %5 = arith.remsi %1, %4 : vector<1x128xi32>
    %c0_i32_1 = arith.constant 0 : i32
    %6 = vector.broadcast %c0_i32_1 : i32 to vector<1x128xi32>
    %7 = arith.cmpi ne, %5, %6 : vector<1x128xi32>
    %c0_i32_2 = arith.constant 0 : i32
    %8 = vector.broadcast %c0_i32_2 : i32 to vector<1x128xi32>
    %9 = arith.cmpi slt, %5, %8 : vector<1x128xi32>
    %c0_i32_3 = arith.constant 0 : i32
    %10 = arith.cmpi slt, %3, %c0_i32_3 : i32
    %11 = vector.broadcast %10 : i1 to vector<1x128xi1>
    %12 = vector.broadcast %11 : vector<1x128xi1> to vector<1x128xi1>
    %13 = arith.xori %9, %12 : vector<1x128xi1>
    %14 = arith.andi %13, %7 : vector<1x128xi1>
    %15 = vector.broadcast %3 : i32 to vector<1x128xi32>
    %16 = arith.addi %5, %15 : vector<1x128xi32>
    %17 = arith.select %14, %16, %5 : vector<1x128xi1>, vector<1x128xi32>
    %c1_i32_4 = arith.constant 1 : i32
    %18 = vector.broadcast %c1_i32_4 : i32 to vector<1x128xi32>
    %19 = arith.cmpi sge, %17, %18 : vector<1x128xi32>
    %c14_i32 = arith.constant 14 : i32
    %20 = vector.broadcast %c14_i32 : i32 to vector<1x128xi32>
    %21 = arith.cmpi sle, %17, %20 : vector<1x128xi32>
    %c1_i32_5 = arith.constant 1 : i32
    %22 = tpu.dynamic_rotate %0 by %c1_i32_5 dim 1 : vector<16x128xf32>, i32 -> vector<16x128xf32>
    %cst = arith.constant 0.000000e+00 : f32
    %23 = vector.shape_cast %19 : vector<1x128xi1> to vector<1x128xi1>
    %24 = vector.broadcast %23 : vector<1x128xi1> to vector<16x128xi1>
    %25 = vector.broadcast %cst : f32 to vector<16x128xf32>
    %26 = arith.select %24, %22, %25 : vector<16x128xi1>, vector<16x128xf32>
    %27 = arith.addf %26, %0 : vector<16x128xf32>
    %c127_i32 = arith.constant 127 : i32
    %28 = tpu.dynamic_rotate %0 by %c127_i32 dim 1 : vector<16x128xf32>, i32 -> vector<16x128xf32>
    %cst_6 = arith.constant 0.000000e+00 : f32
    %29 = vector.shape_cast %21 : vector<1x128xi1> to vector<1x128xi1>
    %30 = vector.broadcast %29 : vector<1x128xi1> to vector<16x128xi1>
    %31 = vector.broadcast %cst_6 : f32 to vector<16x128xf32>
    %32 = arith.select %30, %28, %31 : vector<16x128xi1>, vector<16x128xf32>
    %33 = arith.addf %27, %32 : vector<16x128xf32>
    %c0_7 = arith.constant 0 : index
    %c0_8 = arith.constant 0 : index
    %34 = vector.load %arg2[%c0_7, %c0_8] : memref<16x2xf32, #tpu.memory_space<vmem>>, vector<16x1xf32>
    %c0_9 = arith.constant 0 : index
    %c1 = arith.constant 1 : index
    %35 = vector.load %arg2[%c0_9, %c1] : memref<16x2xf32, #tpu.memory_space<vmem>>, vector<16x1xf32>
    %c1_i32_10 = arith.constant 1 : i32
    %36 = tpu.dynamic_rotate %33 by %c1_i32_10 dim 0 : vector<16x128xf32>, i32 -> vector<16x128xf32>
    %37 = vector.broadcast %34 : vector<16x1xf32> to vector<16x128xf32>
    %38 = arith.mulf %36, %37 : vector<16x128xf32>
    %39 = arith.addf %38, %33 : vector<16x128xf32>
    %c15_i32 = arith.constant 15 : i32
    %40 = tpu.dynamic_rotate %33 by %c15_i32 dim 0 : vector<16x128xf32>, i32 -> vector<16x128xf32>
    %41 = vector.broadcast %35 : vector<16x1xf32> to vector<16x128xf32>
    %42 = arith.mulf %40, %41 : vector<16x128xf32>
    %43 = arith.addf %39, %42 : vector<16x128xf32>
    %c1_i32_11 = arith.constant 1 : i32
    %44 = tpu.dynamic_rotate %43 by %c1_i32_11 dim 0 : vector<16x128xf32>, i32 -> vector<16x128xf32>
    %45 = vector.broadcast %34 : vector<16x1xf32> to vector<16x128xf32>
    %46 = arith.mulf %44, %45 : vector<16x128xf32>
    %c15_i32_12 = arith.constant 15 : i32
    %47 = tpu.dynamic_rotate %43 by %c15_i32_12 dim 0 : vector<16x128xf32>, i32 -> vector<16x128xf32>
    %48 = vector.broadcast %35 : vector<16x1xf32> to vector<16x128xf32>
    %49 = arith.mulf %47, %48 : vector<16x128xf32>
    %cst_13 = arith.constant 2.000000e+00 : f32
    %50 = vector.broadcast %cst_13 : f32 to vector<16x128xf32>
    %51 = arith.mulf %50, %43 : vector<16x128xf32>
    %52 = arith.addf %46, %51 : vector<16x128xf32>
    %53 = arith.addf %52, %49 : vector<16x128xf32>
    %54 = arith.subf %46, %49 : vector<16x128xf32>
    %c1_i32_14 = arith.constant 1 : i32
    %55 = tpu.dynamic_rotate %53 by %c1_i32_14 dim 1 : vector<16x128xf32>, i32 -> vector<16x128xf32>
    %cst_15 = arith.constant 0.000000e+00 : f32
    %56 = vector.shape_cast %19 : vector<1x128xi1> to vector<1x128xi1>
    %57 = vector.broadcast %56 : vector<1x128xi1> to vector<16x128xi1>
    %58 = vector.broadcast %cst_15 : f32 to vector<16x128xf32>
    %59 = arith.select %57, %55, %58 : vector<16x128xi1>, vector<16x128xf32>
    %c127_i32_16 = arith.constant 127 : i32
    %60 = tpu.dynamic_rotate %53 by %c127_i32_16 dim 1 : vector<16x128xf32>, i32 -> vector<16x128xf32>
    %cst_17 = arith.constant 0.000000e+00 : f32
    %61 = vector.shape_cast %21 : vector<1x128xi1> to vector<1x128xi1>
    %62 = vector.broadcast %61 : vector<1x128xi1> to vector<16x128xi1>
    %63 = vector.broadcast %cst_17 : f32 to vector<16x128xf32>
    %64 = arith.select %62, %60, %63 : vector<16x128xi1>, vector<16x128xf32>
    %65 = arith.subf %59, %64 : vector<16x128xf32>
    %cst_18 = arith.constant 0.027777778 : f32
    %66 = vector.broadcast %cst_18 : f32 to vector<16x128xf32>
    %67 = arith.mulf %65, %66 : vector<16x128xf32>
    %c1_i32_19 = arith.constant 1 : i32
    %68 = tpu.dynamic_rotate %54 by %c1_i32_19 dim 1 : vector<16x128xf32>, i32 -> vector<16x128xf32>
    %cst_20 = arith.constant 0.000000e+00 : f32
    %69 = vector.shape_cast %19 : vector<1x128xi1> to vector<1x128xi1>
    %70 = vector.broadcast %69 : vector<1x128xi1> to vector<16x128xi1>
    %71 = vector.broadcast %cst_20 : f32 to vector<16x128xf32>
    %72 = arith.select %70, %68, %71 : vector<16x128xi1>, vector<16x128xf32>
    %cst_21 = arith.constant 2.000000e+00 : f32
    %73 = vector.broadcast %cst_21 : f32 to vector<16x128xf32>
    %74 = arith.mulf %73, %54 : vector<16x128xf32>
    %75 = arith.addf %72, %74 : vector<16x128xf32>
    %c127_i32_22 = arith.constant 127 : i32
    %76 = tpu.dynamic_rotate %54 by %c127_i32_22 dim 1 : vector<16x128xf32>, i32 -> vector<16x128xf32>
    %cst_23 = arith.constant 0.000000e+00 : f32
    %77 = vector.shape_cast %21 : vector<1x128xi1> to vector<1x128xi1>
    %78 = vector.broadcast %77 : vector<1x128xi1> to vector<16x128xi1>
    %79 = vector.broadcast %cst_23 : f32 to vector<16x128xf32>
    %80 = arith.select %78, %76, %79 : vector<16x128xi1>, vector<16x128xf32>
    %81 = arith.addf %75, %80 : vector<16x128xf32>
    %cst_24 = arith.constant 0.027777778 : f32
    %82 = vector.broadcast %cst_24 : f32 to vector<16x128xf32>
    %83 = arith.mulf %81, %82 : vector<16x128xf32>
    %84 = arith.mulf %67, %67 : vector<16x128xf32>
    %85 = arith.mulf %83, %83 : vector<16x128xf32>
    %86 = arith.addf %84, %85 : vector<16x128xf32>
    %cst_25 = arith.constant 9.99999974E-5 : f32
    %87 = vector.broadcast %cst_25 : f32 to vector<16x128xf32>
    %88 = arith.addf %86, %87 : vector<16x128xf32>
    %89 = math.rsqrt %88 : vector<16x128xf32>
    %90 = arith.mulf %88, %89 : vector<16x128xf32>
    %c0_26 = arith.constant 0 : index
    %c0_27 = arith.constant 0 : index
    %91 = vector.load %arg3[%c0_26, %c0_27] : memref<16x128xf32, #tpu.memory_space<vmem>>, vector<16x128xf32>
    tpu.vector_store %arg3[%c0_26, %c0_27], %90 {strides = array<i32>} : memref<16x128xf32, #tpu.memory_space<vmem>>, vector<16x128xf32>,
    return
  }
  func.func @transform_0(%arg0: i32) -> (i32, i32) {
    %c0_i32 = arith.constant 0 : i32
    %c0_i32_0 = arith.constant 0 : i32
    return %arg0, %c0_i32 : i32, i32
  }
  func.func @transform_1(%arg0: i32) -> (i32, i32) {
    %c0_i32 = arith.constant 0 : i32
    %c0_i32_0 = arith.constant 0 : i32
    %c0_i32_1 = arith.constant 0 : i32
    return %c0_i32, %c0_i32_0 : i32, i32
  }
  func.func @transform_2(%arg0: i32) -> (i32, i32) {
    %c0_i32 = arith.constant 0 : i32
    %c0_i32_0 = arith.constant 0 : i32
    return %arg0, %c0_i32 : i32, i32
  }
}

</mosaic_0001>

<bundles_post_ra>
// kernel: tpu_custom_call.1
= control target key start
LH: loop header
LB: loop body
LE: loop exit
PB: predicated region body
PF: predicated region fallthrough
CT: control target
= control target key end

     0   :  { %v214_v2 = vmov 0   ;;  %s215_s13 = smov 1   ;;  %s312_s0 = inlined_call_operand.vmem [shape: f32[16,128], index: 0, kind: input, shape index: {}]   ;;  %s313_s1 = inlined_call_operand.vmem [shape: f32[16,2], index: 1, kind: input, shape index: {}]   ;;  %s314_s2 = inlined_call_operand.hbm [shape: f32[16,128], index: 2, kind: output, shape index: {}]  }
   0x1   :  { %v12_v0 = vld [vmem:[%s312_s0] sm:$0xff]  ;;  %183 = vset.pattern.permute.xlu1 %v214_v2 }
   0x2   :  { %v50_v1 = vld [vmem:[%s313_s1] sm:$0xff]  ;;  %30 = vrot.lane.b32.xlu0 %v12_v0, %s215_s13 }
   0x3   :  { %7 = vsyncpa [#allocation3], 0  ;;  %61 = vperm.xlu1 %183, %v50_v1   ;;  %v13_v3 = vld [vmem:[%s312_s0 + $0x8] sm:$0xff]  ;;  %v216_v4 = vmov 1   ;;  %s217_s18 = smov 127   ;;  %v14_v6 = vlaneseq  ;;  %s218_s0 = smov [#allocation2]  }
   0x4   :  { %184 = vset.pattern.permute.xlu0 %v216_v4  ;;  %v51_v5 = vld [vmem:[%s313_s1 + $0x8] sm:$0xff]  ;;  %s165_s1 = sshll.u32 %s218_s0, 4  ;;  %s166_s1 = int_to_ptr.vmem [resolvable:$true] %s165_s1 }
   0x5   :  { %v15_v7 = vand.u32 127, %v14_v6  ;;  %v55_v20 = vshrl.u32 %v14_v6, 7  ;;  %s190_s19 = scalar_lea.vmem %s166_s1, 256  ;;  %p195_p1 = scmp.lt.s32.totalorder %s166_s1, %s166_s1 }
   0x6   :  { %32 = vrot.lane.b32.xlu0 %v13_v3, %s215_s13  ;;  %p191_p0 = scmp.ne.s32.totalorder %s166_s1, %s190_s19  ;;  %p196_p2 = scmp.lt.s32.totalorder %s190_s19, %s190_s19 }
   0x7   :  { %66 = vperm.xlu1 %183, %v51_v5   ;;  %v20_v9 = vand.u32 15, %v15_v7  ;;  %vm56_vm2 = vcmp.lt.s32.totalorder %v55_v20, 1  ;;  %vm75_vm3 = vcmp.lt.s32.totalorder %v55_v20, 7 }
   0x8   :  { %p197_p3 = por %p196_p2, %p195_p1 }
   0x9   :  { %vm252_vm0 = vcmp.ge.s32.totalorder %v20_v9, 1  ;;  %vm258_vm1 = vcmp.le.s32.totalorder %v20_v9, 14 }
   0xa   :  { %40 = vrot.lane.b32.xlu0 %v12_v0, %s217_s18  ;;  %p198_p4 = pnand %p197_p3, %p191_p0 }
   0xb   :  { %42 = vrot.lane.b32.xlu1 %v13_v3, %s217_s18 }
   0xc   :  { %185 = vset.pattern.permute.xlu1 %v216_v4 }
   0xe   :  { %79 = vperm.xlu0 %184, %v50_v1  }
   0xf   :  { %83 = vperm.xlu1 %185, %v51_v5  }
  0x74   :  { %v31_v8 = vpop.permute.xlu0 %30 }
  0x75   :  { %v36_v13 = vsel %vm252_vm0, %v31_v8, 0.0 }
  0x76   :  { %v38_v16 = vadd.f32 %v36_v13, %v12_v0 }
  0x78   :  { %v33_v10 = vpop.permute.xlu0 %32 }
  0x79   :  { %v37_v18 = vsel %vm252_vm0, %v33_v10, 0.0 }
  0x7a   :  { %v39_v21 = vadd.f32 %v37_v18, %v13_v3 }
  0x7c   :  { %v41_v15 = vpop.permute.xlu0 %40 }
  0x7d   :  { %v46_v19 = vsel %vm258_vm1, %v41_v15, 0.0 }
  0x7e   :  { %v48_v22 = vadd.f32 %v46_v19, %v38_v16 }
  0x80   :  { %v52_v26 = vrot.slane %v48_v22, 7  ;;  %v73_v27 = vrot.slane %v48_v22, 1 }
  0x82   :  { %v62_v12 = vpop.permute.xlu1 %61 }
  0x86   :  { %v67_v17 = vpop.permute.xlu1 %66 }
  0x8a   :  { %v43_v23 = vpop.permute.xlu1 %42 }
  0x8b   :  { %v47_v24 = vsel %vm258_vm1, %v43_v23, 0.0 }
  0x8c   :  { %v49_v25 = vadd.f32 %v47_v24, %v39_v21 }
  0x8d   :  { %v80_v35 = vpop.permute.xlu0 %79 }
  0x8e   :  { %v53_v28 = vrot.slane %v49_v25, 7  ;;  %v74_v29 = vrot.slane %v49_v25, 1  ;;  %v84_v30 = vpop.permute.xlu1 %83 }
  0x90   :  { %v57_v31 = vsel %vm56_vm2, %v52_v26, %v53_v28  ;;  %v77_v32 = vsel %vm75_vm3, %v74_v29, %v73_v27  ;;  %v58_v33 = vsel %vm56_vm2, %v53_v28, %v52_v26  ;;  %v76_v34 = vsel %vm75_vm3, %v73_v27, %v74_v29 }
  0x91   :  { %v70_v36 = vmul.f32 %v67_v17, %v57_v31  ;;  %v69_v37 = vmul.f32 %v62_v12, %v58_v33  ;;  %v87_v39 = vmul.f32 %v84_v30, %v77_v32  ;;  %v86_v41 = vmul.f32 %v80_v35, %v76_v34 }
  0x93   :  { %v72_v38 = vadd.f32 %v70_v36, %v49_v25  ;;  %v71_v40 = vadd.f32 %v69_v37, %v48_v22 }
  0x95   :  { %v89_v42 = vadd.f32 %v87_v39, %v72_v38  ;;  %v88_v43 = vadd.f32 %v86_v41, %v71_v40 }
  0x97   :  { %v91_v44 = vrot.slane %v89_v42, 7  ;;  %v97_v45 = vrot.slane %v89_v42, 1  ;;  %v90_v46 = vrot.slane %v88_v43, 7  ;;  %v96_v47 = vrot.slane %v88_v43, 1 }
  0x98   :  { %v102_v48 = vmul.f32 2.0, %v88_v43  ;;  %v103_v49 = vmul.f32 2.0, %v89_v42 }
  0x99   :  { %v93_v50 = vsel %vm56_vm2, %v91_v44, %v90_v46  ;;  %v98_v51 = vsel %vm75_vm3, %v96_v47, %v97_v45  ;;  %v92_v52 = vsel %vm56_vm2, %v90_v46, %v91_v44  ;;  %v99_v53 = vsel %vm75_vm3, %v97_v45, %v96_v47 }
  0x9a   :  { %v94_v54 = vmul.f32 %v93_v50, %v62_v12  ;;  %v100_v55 = vmul.f32 %v98_v51, %v80_v35  ;;  %v95_v56 = vmul.f32 %v92_v52, %v67_v17  ;;  %v101_v57 = vmul.f32 %v99_v53, %v84_v30 }
  0x9c   :  { %v104_v58 = vadd.f32 %v102_v48, %v94_v54  ;;  %v108_v59 = vsub.f32 %v94_v54, %v100_v55  ;;  %v109_v60 = vsub.f32 %v95_v56, %v101_v57  ;;  %v105_v61 = vadd.f32 %v103_v49, %v95_v56 }
  0x9e   :  { %126 = vrot.lane.b32.xlu1 %v108_v59, %s215_s13  ;;  %128 = vrot.lane.b32.xlu0 %v109_v60, %s215_s13  ;;  %v106_v62 = vadd.f32 %v104_v58, %v100_v55  ;;  %v107_v63 = vadd.f32 %v105_v61, %v101_v57  ;;  %v132_v13 = vmul.f32 2.0, %v108_v59  ;;  %v133_v15 = vmul.f32 2.0, %v109_v60 }
  0xa2   :  { %110 = vrot.lane.b32.xlu1 %v106_v62, %s215_s13  ;;  %112 = vrot.lane.b32.xlu0 %v107_v63, %s215_s13 }
  0xa6   :  { %116 = vrot.lane.b32.xlu1 %v106_v62, %s217_s18  ;;  %118 = vrot.lane.b32.xlu0 %v107_v63, %s217_s18 }
  0xaa   :  { %136 = vrot.lane.b32.xlu1 %v108_v59, %s217_s18  ;;  %138 = vrot.lane.b32.xlu0 %v109_v60, %s217_s18 }
 0x110   :  { %v127_v0 = vpop.permute.xlu1 %126  ;;  %v129_v1 = vpop.permute.xlu0 %128 }
 0x111   :  { %v130_v4 = vsel %vm252_vm0, %v127_v0, 0.0  ;;  %v131_v5 = vsel %vm252_vm0, %v129_v1, 0.0 }
 0x112   :  { %v134_v18 = vadd.f32 %v132_v13, %v130_v4  ;;  %v135_v19 = vadd.f32 %v133_v15, %v131_v5 }
 0x114   :  { %v111_v2 = vpop.permute.xlu1 %110  ;;  %v113_v3 = vpop.permute.xlu0 %112 }
 0x115   :  { %v114_v8 = vsel %vm252_vm0, %v111_v2, 0.0  ;;  %v115_v9 = vsel %vm252_vm0, %v113_v3, 0.0 }
 0x118   :  { %v117_v6 = vpop.permute.xlu1 %116  ;;  %v119_v7 = vpop.permute.xlu0 %118 }
 0x119   :  { %v120_v10 = vsel %vm258_vm1, %v117_v6, 0.0  ;;  %v121_v12 = vsel %vm258_vm1, %v119_v7, 0.0 }
 0x11a   :  { %v122_v16 = vsub.f32 %v114_v8, %v120_v10  ;;  %v123_v17 = vsub.f32 %v115_v9, %v121_v12 }
 0x11c   :  { %v137_v20 = vpop.permute.xlu1 %136  ;;  %v139_v21 = vpop.permute.xlu0 %138  ;;  %v124_v23 = vmul.f32 0.027777778, %v122_v16  ;;  %v125_v24 = vmul.f32 0.027777778, %v123_v17 }
 0x11d   :  { %v140_v22 = vsel %vm258_vm1, %v137_v20, 0.0  ;;  %v141_v11 = vsel %vm258_vm1, %v139_v21, 0.0 }
 0x11e   :  { %v142_v25 = vadd.f32 %v140_v22, %v134_v18  ;;  %v143_v26 = vadd.f32 %v141_v11, %v135_v19  ;;  %v146_v29 = vmul.f32 %v124_v23, %v124_v23  ;;  %v147_v30 = vmul.f32 %v125_v24, %v125_v24 }
 0x120   :  { %v144_v27 = vmul.f32 0.027777778, %v142_v25  ;;  %v145_v28 = vmul.f32 0.027777778, %v143_v26 }
 0x122   :  { %v148_v31 = vmul.f32 %v144_v27, %v144_v27  ;;  %v149_v32 = vmul.f32 %v145_v28, %v145_v28 }
 0x124   :  { %v150_v33 = vadd.f32 %v148_v31, %v146_v29  ;;  %v151_v34 = vadd.f32 %v149_v32, %v147_v30 }
 0x126   :  { %v152_v35 = vadd.f32 0.0001, %v150_v33  ;;  %v153_v36 = vadd.f32 0.0001, %v151_v34 }
 0x128   :  { %186 = vrsqrt.f32 %v152_v35 }
 0x129   :  { %188 = vrsqrt.f32 %v153_v36 }
 0x132   :  { %v187_v14 = vpop.eup %186 }
 0x133   :  { %v189_v37 = vpop.eup %188  ;;  %v156_v38 = vmul.f32 %v187_v14, %v152_v35 }
 0x134   :  { %v157_v39 = vmul.f32 %v189_v37, %v153_v36 }
 0x135   :  { %158 = vst [vmem:[#allocation2] sm:$0xff] %v156_v38 }
 0x136   :  { %159 = vst [vmem:[#allocation2 + $0x8] sm:$0xff] %v157_v39 }
 0x137   :  { %201 = shalt.err (!%p198_p4)
}
 0x138   :  { %s202_s22 = scalar_lea.hbm %s314_s2, 256 }
 0x139   :  { %p203_p5 = scmp.ne.s32.totalorder %s314_s2, %s202_s22  ;;  %p206_p6 = scmp.lt.u32.totalorder %s202_s22, %s314_s2 }
 0x13b   :  { %p208_p7 = pnand %p206_p6, %p203_p5 }
 0x13d   :  { %211 = shalt.err (!%p208_p7)
}
 0x13e   :  { %s219_s27 = smov 128   ;;  %s220_s28 = smov 8  }
 0x13f   :  { %171 = dma.vmem_to_hbm [thread:$0]  %s166_s1, 256, %s314_s2, [#allocation3], %s219_s27, %s219_s27, %s220_s28  }
 0x140   :  { %212 = dma.done.wait [#allocation3], 256  }
 0x141   :  { %213 = vsyncadd [#allocation3], 4294967040 }
 0x142   :  { %175 = vsyncpa [#allocation3], 1 }

</bundles_post_ra>
